<compile_context>
chip_gen: v5e
topology: v5e:2x2
jax: 0.10.0
libtpu: 0.0.40
codegen_flags: <defaults>
</compile_context>

<pallas_src>
import functools

import jax
import jax.numpy as jnp
from jax.experimental import pallas as pl
from jax.experimental.pallas import tpu as pltpu


def _round_up(x, m):
    return ((x + m - 1) // m) * m


# ----------------------------------------------------------------------------
# Pallas kernel: one (agent, M-tile) step of the 3-layer MLP critic
#   Linear -> ReLU -> Linear -> ReLU -> Linear(H -> 1)
# ----------------------------------------------------------------------------
def _agent_critic_kernel(x_ref, w1_ref, b1_ref, w2_ref, b2_ref, w3_ref, b3_ref,
                         o_ref):
    # x_ref : (tm, D) bf16     w1_ref: (D, H) bf16     b1_ref: (1, H) f32
    # w2_ref: (H, H) bf16      b2_ref: (1, H) f32
    # w3_ref: (1, H) f32       b3_ref: (1, 1) f32
    # o_ref : (1, tm) f32   -- lane-dense output (rows on the lane axis)
    h1 = jnp.dot(x_ref[...], w1_ref[...],
                 preferred_element_type=jnp.float32) + b1_ref[...]
    h1 = jnp.maximum(h1, 0.0)                                   # ReLU (f32)
    h2 = jnp.dot(h1.astype(jnp.bfloat16), w2_ref[...],
                 preferred_element_type=jnp.float32) + b2_ref[...]
    h2 = jnp.maximum(h2, 0.0)                                   # ReLU (f32)
    # Final H->1 layer on VPU (mul) + XLU (lane reduce): keeps the width-1
    # matmul off the MXU and the result goes straight to a lane-dense store.
    v = jnp.sum(h2 * w3_ref[...], axis=-1)                      # (tm,)
    o_ref[...] = v[None, :] + b3_ref[...]                       # (1, tm)


def ac_critic_pallas(inputs_amd, params, *, tm_max=1024):
    """Run all per-agent critics.

    inputs_amd: (n_agents, M, D) float32, M = bs * seq_len.
    params: dict of stacked per-agent weights (f32).
    returns: (n_agents, M) float32 values.
    """
    n_agents, M, D = inputs_amd.shape
    H = params["w1"].shape[-1]

    # Tile the M (rows) axis so x is pipelined and VMEM stays bounded.
    if M <= tm_max:
        tm = _round_up(M, 16)            # single tile per agent (bf16 sublane)
    else:
        tm = tm_max                      # multiple of 128
    M_pad = _round_up(M, tm)
    if M_pad != M:
        inputs_amd = jnp.concatenate(
            [inputs_amd,
             jnp.zeros((n_agents, M_pad - M, D), inputs_amd.dtype)], axis=1)
    num_m = M_pad // tm

    # bf16 operands for the bandwidth-dominant reads; biases / w3 stay f32.
    x_bf = inputs_amd.astype(jnp.bfloat16)
    w1_bf = params["w1"].astype(jnp.bfloat16)
    w2_bf = params["w2"].astype(jnp.bfloat16)
    w3_row = jnp.swapaxes(params["w3"], 1, 2)        # (n_agents, 1, H) f32
    b1, b2, b3 = params["b1"], params["b2"], params["b3"]

    # `None` in block_shape == pl.Squeezed(): the size-1 agent dim is squeezed
    # out so the kernel sees clean 2-D refs.
    out = pl.pallas_call(
        _agent_critic_kernel,
        out_shape=jax.ShapeDtypeStruct((n_agents, 1, M_pad), jnp.float32),
        grid_spec=pltpu.PrefetchScalarGridSpec(
            num_scalar_prefetch=0,
            grid=(n_agents, num_m),                  # agent outer, M tiles inner
            in_specs=[
                pl.BlockSpec((None, tm, D), lambda i, m: (i, m, 0)),  # x
                pl.BlockSpec((None, D, H), lambda i, m: (i, 0, 0)),   # w1
                pl.BlockSpec((None, 1, H), lambda i, m: (i, 0, 0)),   # b1
                pl.BlockSpec((None, H, H), lambda i, m: (i, 0, 0)),   # w2
                pl.BlockSpec((None, 1, H), lambda i, m: (i, 0, 0)),   # b2
                pl.BlockSpec((None, 1, H), lambda i, m: (i, 0, 0)),   # w3 row
                pl.BlockSpec((None, 1, 1), lambda i, m: (i, 0, 0)),   # b3
            ],
            out_specs=pl.BlockSpec((None, 1, tm), lambda i, m: (i, 0, m)),
        ),
        compiler_params=pltpu.CompilerParams(
            dimension_semantics=("parallel", "parallel"),
            vmem_limit_bytes=32 * 1024 * 1024),
    )(x_bf, w1_bf, b1, w2_bf, b2, w3_row, b3)
    return out[:, 0, :M]                             # (n_agents, M)


# ----------------------------------------------------------------------------
# Glue: input construction (obs || last_actions || agent_id) and reshapes.
# ----------------------------------------------------------------------------
def build_inputs(obs, actions_onehot, n_agents, obs_last_action=True,
                 obs_agent_id=True):
    """obs: (bs, seq, n_agents, obs_dim); actions_onehot: (bs, seq, n_agents, n_actions)."""
    bs, seq_len = obs.shape[0], obs.shape[1]
    parts = [obs]
    if obs_last_action:
        if seq_len > 1:
            last_actions = jnp.concatenate(
                [jnp.zeros_like(actions_onehot[:, 0:1]),
                 actions_onehot[:, :-1]], axis=1)
        else:
            last_actions = jnp.zeros_like(actions_onehot)
        parts.append(last_actions)
    if obs_agent_id:
        agent_ids = jnp.eye(n_agents, dtype=obs.dtype)[None, None]
        agent_ids = jnp.broadcast_to(agent_ids, (bs, seq_len, n_agents, n_agents))
        parts.append(agent_ids)
    return jnp.concatenate(parts, axis=-1)   # (bs, seq, n_agents, D)


def ac_critic_forward(obs, actions_onehot, params, n_agents,
                      obs_last_action=True, obs_agent_id=True):
    bs, seq_len = obs.shape[0], obs.shape[1]
    inputs = build_inputs(obs, actions_onehot, n_agents,
                          obs_last_action, obs_agent_id)
    D = inputs.shape[-1]
    # (bs, seq, n_agents, D) -> (n_agents, bs*seq, D)
    inputs_amd = jnp.transpose(inputs, (2, 0, 1, 3)).reshape(
        n_agents, bs * seq_len, D)
    v_am = ac_critic_pallas(inputs_amd, params)          # (n_agents, M)
    # -> (bs, seq, n_agents, 1)  (matches th.stack(vs, dim=2))
    v = jnp.transpose(v_am.reshape(n_agents, bs, seq_len), (1, 2, 0))[..., None]
    return v


def init_params(key, n_agents, input_dim, hidden_dim):
    """Deterministic per-agent weight init (stacked along agent axis)."""
    keys = jax.random.split(key, 6)
    def u(k, shape, fan_in):
        bound = 1.0 / jnp.sqrt(fan_in)
        return jax.random.uniform(k, shape, jnp.float32, -bound, bound)
    return {
        "w1": u(keys[0], (n_agents, input_dim, hidden_dim), input_dim),
        "b1": u(keys[1], (n_agents, 1, hidden_dim), input_dim),
        "w2": u(keys[2], (n_agents, hidden_dim, hidden_dim), hidden_dim),
        "b2": u(keys[3], (n_agents, 1, hidden_dim), hidden_dim),
        "w3": u(keys[4], (n_agents, hidden_dim, 1), hidden_dim),
        "b3": u(keys[5], (n_agents, 1, 1), hidden_dim),
    }


# Pure-JAX f32 reference (matches the PyTorch module semantics).
def _reference_forward(obs, actions_onehot, params, n_agents):
    inputs = build_inputs(obs, actions_onehot, n_agents)
    bs, seq_len = obs.shape[0], obs.shape[1]
    vs = []
    for i in range(n_agents):
        x = inputs[:, :, i].reshape(-1, inputs.shape[-1])
        h1 = jax.nn.relu(x @ params["w1"][i] + params["b1"][i][0])
        h2 = jax.nn.relu(h1 @ params["w2"][i] + params["b2"][i][0])
        v = h2 @ params["w3"][i] + params["b3"][i][0]
        vs.append(v.reshape(bs, seq_len, 1))
    return jnp.stack(vs, axis=2)


if __name__ == "__main__":
    # Small, forward-implied shapes.
    bs, seq_len = 2, 8
    n_agents, n_actions, obs_dim, hidden_dim = 3, 5, 10, 32
    input_dim = obs_dim + n_actions + n_agents   # obs + last_action + agent_id

    key = jax.random.PRNGKey(0)
    k_obs, k_act, k_par = jax.random.split(key, 3)

    obs = jax.random.normal(k_obs, (bs, seq_len, n_agents, obs_dim),
                            dtype=jnp.float32)
    act_idx = jax.random.randint(k_act, (bs, seq_len, n_agents), 0, n_actions)
    actions_onehot = jax.nn.one_hot(act_idx, n_actions, dtype=jnp.float32)

    params = init_params(k_par, n_agents, input_dim, hidden_dim)

    fwd = jax.jit(functools.partial(ac_critic_forward, n_agents=n_agents))
    v = fwd(obs, actions_onehot, params)
    jax.block_until_ready(v)

    v_ref = _reference_forward(obs, actions_onehot, params, n_agents)
    assert v.shape == (bs, seq_len, n_agents, 1), v.shape
    # Tolerance loosened vs f32 reference because x/w1/w2 are bf16 in-kernel
    # (accumulation stays f32).
    assert jnp.allclose(v, v_ref, atol=2e-2, rtol=2e-2), \
        float(jnp.max(jnp.abs(v - v_ref)))

    print("KERNEL_OK")
</pallas_src>

<mosaic_0001>
module attributes {stable_mosaic.version = 11 : i64} {
  func.func @_agent_critic_kernel(%arg0: i32, %arg1: i32, %arg2: memref<1x16x18xbf16, #tpu.memory_space<vmem>>, %arg3: memref<1x18x32xbf16, #tpu.memory_space<vmem>>, %arg4: memref<1x1x32xf32, #tpu.memory_space<vmem>>, %arg5: memref<1x32x32xbf16, #tpu.memory_space<vmem>>, %arg6: memref<1x1x32xf32, #tpu.memory_space<vmem>>, %arg7: memref<1x1x32xf32, #tpu.memory_space<vmem>>, %arg8: memref<1x1x1xf32, #tpu.memory_space<vmem>>, %arg9: memref<1x1x16xf32, #tpu.memory_space<vmem>>) attributes {dimension_semantics = [#tpu.dimension_semantics<parallel>, #tpu.dimension_semantics<parallel>], iteration_bounds = array<i64: 3, 1>, scalar_prefetch = 0 : i64, scratch_operands = 0 : i64, tpu.core_type = #tpu.core_type<tc>, window_params = [{transform_indices = @transform_0, window_bounds = array<i64: 1, 16, 18>}, {transform_indices = @transform_1, window_bounds = array<i64: 1, 18, 32>}, {transform_indices = @transform_2, window_bounds = array<i64: 1, 1, 32>}, {transform_indices = @transform_3, window_bounds = array<i64: 1, 32, 32>}, {transform_indices = @transform_4, window_bounds = array<i64: 1, 1, 32>}, {transform_indices = @transform_5, window_bounds = array<i64: 1, 1, 32>}, {transform_indices = @transform_6, window_bounds = array<i64: 1, 1, 1>}, {transform_indices = @transform_7, window_bounds = array<i64: 1, 1, 16>}]} {
    %c0 = arith.constant 0 : index
    %c0_0 = arith.constant 0 : index
    %c0_1 = arith.constant 0 : index
    %0 = vector.load %arg2[%c0, %c0_0, %c0_1] : memref<1x16x18xbf16, #tpu.memory_space<vmem>>, vector<1x16x18xbf16>
    %1 = vector.shape_cast %0 : vector<1x16x18xbf16> to vector<16x18xbf16>
    %c0_2 = arith.constant 0 : index
    %c0_3 = arith.constant 0 : index
    %c0_4 = arith.constant 0 : index
    %2 = vector.load %arg3[%c0_2, %c0_3, %c0_4] : memref<1x18x32xbf16, #tpu.memory_space<vmem>>, vector<1x18x32xbf16>
    %3 = vector.shape_cast %2 : vector<1x18x32xbf16> to vector<18x32xbf16>
    %cst = arith.constant dense<0.000000e+00> : vector<16x32xf32>
    %4 = tpu.matmul %1, %3, %cst {dimension_numbers = #tpu.dot_dimension_numbers<[1], [0], [0], [1], [0, 0, 1, 1], [], []>} : vector<16x18xbf16>, vector<18x32xbf16>, vector<16x32xf32> -> vector<16x32xf32>
    %c0_5 = arith.constant 0 : index
    %c0_6 = arith.constant 0 : index
    %c0_7 = arith.constant 0 : index
    %5 = vector.load %arg4[%c0_5, %c0_6, %c0_7] : memref<1x1x32xf32, #tpu.memory_space<vmem>>, vector<1x1x32xf32>
    %6 = vector.shape_cast %5 : vector<1x1x32xf32> to vector<1x32xf32>
    %7 = vector.broadcast %6 : vector<1x32xf32> to vector<16x32xf32>
    %8 = arith.addf %4, %7 : vector<16x32xf32>
    %cst_8 = arith.constant 0.000000e+00 : f32
    %9 = vector.broadcast %cst_8 : f32 to vector<16x32xf32>
    %10 = arith.maximumf %8, %9 : vector<16x32xf32>
    %11 = arith.truncf %10 : vector<16x32xf32> to vector<16x32xbf16>
    %c0_9 = arith.constant 0 : index
    %c0_10 = arith.constant 0 : index
    %c0_11 = arith.constant 0 : index
    %12 = vector.load %arg5[%c0_9, %c0_10, %c0_11] : memref<1x32x32xbf16, #tpu.memory_space<vmem>>, vector<1x32x32xbf16>
    %13 = vector.shape_cast %12 : vector<1x32x32xbf16> to vector<32x32xbf16>
    %cst_12 = arith.constant dense<0.000000e+00> : vector<16x32xf32>
    %14 = tpu.matmul %11, %13, %cst_12 {dimension_numbers = #tpu.dot_dimension_numbers<[1], [0], [0], [1], [0, 0, 1, 1], [], []>} : vector<16x32xbf16>, vector<32x32xbf16>, vector<16x32xf32> -> vector<16x32xf32>
    %c0_13 = arith.constant 0 : index
    %c0_14 = arith.constant 0 : index
    %c0_15 = arith.constant 0 : index
    %15 = vector.load %arg6[%c0_13, %c0_14, %c0_15] : memref<1x1x32xf32, #tpu.memory_space<vmem>>, vector<1x1x32xf32>
    %16 = vector.shape_cast %15 : vector<1x1x32xf32> to vector<1x32xf32>
    %17 = vector.broadcast %16 : vector<1x32xf32> to vector<16x32xf32>
    %18 = arith.addf %14, %17 : vector<16x32xf32>
    %cst_16 = arith.constant 0.000000e+00 : f32
    %19 = vector.broadcast %cst_16 : f32 to vector<16x32xf32>
    %20 = arith.maximumf %18, %19 : vector<16x32xf32>
    %c0_17 = arith.constant 0 : index
    %c0_18 = arith.constant 0 : index
    %c0_19 = arith.constant 0 : index
    %21 = vector.load %arg7[%c0_17, %c0_18, %c0_19] : memref<1x1x32xf32, #tpu.memory_space<vmem>>, vector<1x1x32xf32>
    %22 = vector.shape_cast %21 : vector<1x1x32xf32> to vector<1x32xf32>
    %23 = vector.broadcast %22 : vector<1x32xf32> to vector<16x32xf32>
    %24 = arith.mulf %20, %23 : vector<16x32xf32>
    %cst_20 = arith.constant dense<0.000000e+00> : vector<16xf32>
    %25 = vector.multi_reduction <add>, %24, %cst_20 [1] : vector<16x32xf32> to vector<16xf32>
    %26 = vector.shape_cast %25 : vector<16xf32> to vector<1x16xf32>
    %c0_21 = arith.constant 0 : index
    %c0_22 = arith.constant 0 : index
    %c0_23 = arith.constant 0 : index
    %27 = vector.load %arg8[%c0_21, %c0_22, %c0_23] : memref<1x1x1xf32, #tpu.memory_space<vmem>>, vector<1x1x1xf32>
    %28 = vector.shape_cast %27 : vector<1x1x1xf32> to vector<1x1xf32>
    %29 = vector.broadcast %28 : vector<1x1xf32> to vector<1x16xf32>
    %30 = arith.addf %26, %29 : vector<1x16xf32>
    %c0_24 = arith.constant 0 : index
    %c0_25 = arith.constant 0 : index
    %c0_26 = arith.constant 0 : index
    %31 = vector.load %arg9[%c0_24, %c0_25, %c0_26] : memref<1x1x16xf32, #tpu.memory_space<vmem>>, vector<1x1x16xf32>
    %32 = vector.shape_cast %31 : vector<1x1x16xf32> to vector<1x16xf32>
    %33 = vector.shape_cast %30 : vector<1x16xf32> to vector<1x1x16xf32>
    tpu.vector_store %arg9[%c0_24, %c0_25, %c0_26], %33 {strides = array<i32>} : memref<1x1x16xf32, #tpu.memory_space<vmem>>, vector<1x1x16xf32>,
    return
  }
  func.func @transform_0(%arg0: i32, %arg1: i32) -> (i32, i32, i32) {
    %c0_i32 = arith.constant 0 : i32
    %c0_i32_0 = arith.constant 0 : i32
    return %arg0, %arg1, %c0_i32 : i32, i32, i32
  }
  func.func @transform_1(%arg0: i32, %arg1: i32) -> (i32, i32, i32) {
    %c0_i32 = arith.constant 0 : i32
    %c0_i32_0 = arith.constant 0 : i32
    %c0_i32_1 = arith.constant 0 : i32
    return %arg0, %c0_i32, %c0_i32_0 : i32, i32, i32
  }
  func.func @transform_2(%arg0: i32, %arg1: i32) -> (i32, i32, i32) {
    %c0_i32 = arith.constant 0 : i32
    %c0_i32_0 = arith.constant 0 : i32
    %c0_i32_1 = arith.constant 0 : i32
    return %arg0, %c0_i32, %c0_i32_0 : i32, i32, i32
  }
  func.func @transform_3(%arg0: i32, %arg1: i32) -> (i32, i32, i32) {
    %c0_i32 = arith.constant 0 : i32
    %c0_i32_0 = arith.constant 0 : i32
    %c0_i32_1 = arith.constant 0 : i32
    return %arg0, %c0_i32, %c0_i32_0 : i32, i32, i32
  }
  func.func @transform_4(%arg0: i32, %arg1: i32) -> (i32, i32, i32) {
    %c0_i32 = arith.constant 0 : i32
    %c0_i32_0 = arith.constant 0 : i32
    %c0_i32_1 = arith.constant 0 : i32
    return %arg0, %c0_i32, %c0_i32_0 : i32, i32, i32
  }
  func.func @transform_5(%arg0: i32, %arg1: i32) -> (i32, i32, i32) {
    %c0_i32 = arith.constant 0 : i32
    %c0_i32_0 = arith.constant 0 : i32
    %c0_i32_1 = arith.constant 0 : i32
    return %arg0, %c0_i32, %c0_i32_0 : i32, i32, i32
  }
  func.func @transform_6(%arg0: i32, %arg1: i32) -> (i32, i32, i32) {
    %c0_i32 = arith.constant 0 : i32
    %c0_i32_0 = arith.constant 0 : i32
    %c0_i32_1 = arith.constant 0 : i32
    return %arg0, %c0_i32, %c0_i32_0 : i32, i32, i32
  }
  func.func @transform_7(%arg0: i32, %arg1: i32) -> (i32, i32, i32) {
    %c0_i32 = arith.constant 0 : i32
    %c0_i32_0 = arith.constant 0 : i32
    return %arg0, %c0_i32, %arg1 : i32, i32, i32
  }
}

</mosaic_0001>

<bundles_post_ra>
// kernel: squeeze.1
= control target key start
LH: loop header
LB: loop body
LE: loop exit
PB: predicated region body
PF: predicated region fallthrough
CT: control target
= control target key end

     0   :  { %vm7_vm0 = vcmask 64512   ;;  %s59_s0 = inlined_call_operand.vmem [shape: f32[3,16], index: 0, kind: input, shape index: {}]   ;;  %s60_s1 = inlined_call_operand.vmem [shape: f32[3,2,8], index: 1, kind: output, shape index: {}]  }
   0x1   :  { %v4_v0 = vld [vmem:[%s59_s0] sm:$0xf]  ;;  %s36_s0 = smov 120  }
   0x2   :  { %5 = vst [vmem:[#allocation1] sm:$0xf] %v4_v0 }
   0x9   :  { %v9_v1 = vld [vmem:[#allocation1] sm:$0x7]  }
   0xa   :  { %v6_v2 = vld [vmem:[#allocation1] sm:$0x7]   ;;  %10 = vrot.lane.b32.xlu0 %v9_v1, %s36_s0 }
   0xb   :  { %8 = vst.msk [vmem:[#allocation0] ss:$8 sm:$0x7] %vm7_vm0, %v6_v2  }
  0x7c   :  { %v11_v3 = vpop.permute.xlu0 %10  }
  0x7d   :  { %14 = vst.msk [vmem:[#allocation0 + $0x1] ss:$8 sm:$0x7] %vm7_vm0, %v11_v3  }
  0x84   :  { %v17_v4 = vld [vmem:[#allocation0] sm:$0x3]  ;;  %v22_v5 = vld [vmem:[#allocation0 + $0x8] sm:$0x3]  ;;  %v28_v6 = vld [vmem:[#allocation0 + $0x10] sm:$0x3] }
  0x85   :  { %20 = vst [vmem:[%s60_s1] sm:$0x3] %v17_v4 }
  0x86   :  { %33 = vst [vmem:[%s60_s1 + $0x2] sm:$0x3] %v22_v5 }
  0x87   :  { %34 = vst [vmem:[%s60_s1 + $0x4] sm:$0x3] %v28_v6 }

// kernel: ac_critic_forward.1
= control target key start
LH: loop header
LB: loop body
LE: loop exit
PB: predicated region body
PF: predicated region fallthrough
CT: control target
= control target key end

     0   :  { %s791_s24 = smov 0   ;;  %s793_s25 = smov 0   ;;  %s855_s0 = inlined_call_operand.vmem [shape: bf16[3,16,18], index: 0, kind: input, shape index: {}]   ;;  %s856_s1 = inlined_call_operand.vmem [shape: bf16[3,18,32], index: 1, kind: input, shape index: {}]   ;;  %s857_s2 = inlined_call_operand.vmem [shape: f32[3,1,32], index: 2, kind: input, shape index: {}]   ;;  %s858_s3 = inlined_call_operand.vmem [shape: bf16[3,32,32], index: 3, kind: input, shape index: {}]   ;;  %s859_s4 = inlined_call_operand.vmem [shape: f32[3,1,32], index: 4, kind: input, shape index: {}]   ;;  %s860_s5 = inlined_call_operand.vmem [shape: f32[3,1,32], index: 5, kind: input, shape index: {}]   ;;  %s861_s6 = inlined_call_operand.vmem [shape: f32[3,1,1], index: 6, kind: input, shape index: {}]   ;;  %s862_s7 = inlined_call_operand.vmem [shape: f32[3,1,16], index: 7, kind: output, shape index: {}]  }
   0x1   :  { %s795_s26 = smov 0  }
   0x2 LB: > { %s29_s27 = sadd.s32 1, %s744_s25  ;;  %p664_p0 = scmp.ge.s32.totalorder %s748_s26, 1  ;;  %s748_s26 = sphi %s795_s26, %s17_s26   ;;  %s744_s25 = sphi %s793_s25, %s864_s25   ;;  %s740_s24 = sphi %s791_s24, %s863_s24  }
   0x3   : > { %p31_p1 = scmp.ge.s32.totalorder %s29_s27, 3  ;;  %p310_p2 = scmp.lt.s32.totalorder %s748_s26, 4 }
   0x5   : > { %s866_s27 = smov (%p31_p1, %s29_s27), 0  ;;  %p311_p3 = pnand %p664_p0, %p310_p2 }
   0x6   : > { %p370_p4 = scmp.lt.s32.totalorder (!%p311_p3), %s740_s24, 2 }
   0x7   : > { %314 = sbr.rel (%p311_p3) target bundleno = 432 (0x1b0), region = 48 }
   0xc   : > { %s868_s24 = smov (!%p370_p4, %s740_s24), 2  ;;  %vm435_vm0 = vcmask 1040384   ;;  %vm431_vm1 = vcmask 146432   ;;  %v750_v9 = vmov 0   ;;  %vm476_vm2 = vcmask 261120  }
   0xd   : > { %s696_s28 = smul.u32 12, %s868_s24  ;;  %s386_s8 = scalar_lea.vmem %s857_s2, %s868_s24  ;;  %722 = vset.pattern.permute.xlu0 %v750_v9  ;;  %v519_v31 = vlaneseq  ;;  %vm524_vm3 = vcmask 130112   ;;  %vm527_vm4 = vcmask 122880  }
   0xe   : > { %s690_s12 = sshll.u32 %s868_s24, 3  ;;  %s394_s18 = scalar_lea.vmem %s859_s4, %s868_s24  ;;  %v723_v11 = vld [vmem:[%s386_s8] ss:$0 sm:$0xff] }
   0xf   : > { %s383_s11 = scalar_lea.vmem %s856_s1, %s696_s28  ;;  %s377_s15 = scalar_lea.vmem %s855_s0, %s690_s12  ;;  %v724_v18 = vld [vmem:[%s394_s18] ss:$0 sm:$0xff]  ;;  %v520_v34 = vand.u32 127, %v519_v31 }
  0x10   : > { %v412_v0 = vld [vmem:[%s383_s11 + $0x8] sm:$0x1]  ;;  %v693_v4 = vld [vmem:[%s383_s11] sm:$0xff]  ;;  %s691_s19 = sshll.u32 %s868_s24, 4  ;;  %s400_s29 = scalar_lea.vmem %s861_s6, %s868_s24 }
  0x11   : > { %v427_v1 = vunpack.c.l.b16 %v412_v0  ;;  %v692_v5 = vld [vmem:[%s377_s15] sm:$0xff]  ;;  %s391_s22 = scalar_lea.vmem %s858_s3, %s691_s19  ;;  %s397_s10 = scalar_lea.vmem %s860_s5, %s868_s24  ;;  %v522_v36 = vadd.s32 4294967288, %v520_v34 }
  0x12   : > { %v695_v6 = vld [vmem:[%s391_s22 + $0x8] sm:$0xff]  ;;  %v694_v7 = vld [vmem:[%s391_s22] sm:$0xff]  ;;  %s406_s12 = scalar_lea.vmem %s862_s7, %s868_s24 }
  0x13   : > { %v429_v2 = vpack.c.b16 %v427_v1, %v427_v1  ;;  %486 = vmatpush.bf16.msra.mxu1 %v695_v6  ;;  %v508_v8 = vld [vmem:[%s400_s29] sm:$0x1] }
  0x14   : > { %511 = vperm.xlu0 %722, %v508_v8   ;;  %v725_v21 = vld [vmem:[%s397_s10] ss:$0 sm:$0xff] }
  0x15   : > { %v437_v3 = vsel %vm435_vm0, %v429_v2, 0 }
  0x16   : > { %445 = vmatpush.bf16.msra.mxu0 %v437_v3 }
  0x17   : > { %487 = vmatpush.bf16.msra.mxu1 %v694_v7 }
  0x1a   : > { %446 = vmatpush.bf16.msra.mxu0 %v693_v4 }
  0x1d   : > { %678 = vmatmul.msk.bf16.vlgmr.msra.gmra.mxu0 %vm431_vm1, %v692_v5 }
  0x86   : > { %v512_v30 = vpop.permute.xlu0 %511 }
  0x87   : > { %v514_v33 = vperm.slane %v512_v30, 0 }
  0x9a   : > { %v448_v10 = vpop.f32.mrf.mxu0 }
  0x9b   : > { %v449_v12 = vadd.f32 %v723_v11, %v448_v10 }
  0x9d   : > { %v453_v15 = vmax.f32 %v449_v12, 0.0 }
  0xa2   : > { %v450_v13 = vpop.f32.mrf.mxu0 }
  0xa3   : > { %v451_v14 = vadd.f32 %v723_v11, %v450_v13 }
  0xa5   : > { %v454_v16 = vmax.f32 %v451_v14, 0.0 }
  0xa7   : > { %v455_v17 = vpack.c.bf16 %v454_v16, %v453_v15 }
  0xa9   : > { %687 = vmatmul.msk.bf16.vlgmr.msra.gmra.mxu1 %vm476_vm2, %v455_v17 }
 0x126   : > { %v489_v19 = vpop.f32.mrf.mxu1 }
 0x127   : > { %v490_v20 = vadd.f32 %v724_v18, %v489_v19 }
 0x129   : > { %v494_v22 = vmax.f32 %v490_v20, 0.0 }
 0x12b   : > { %v500_v23 = vmul.f32 %v725_v21, %v494_v22 }
 0x12d   : > { %v502_v24 = vsel %vm476_vm2, %v500_v23, 0.0 }
 0x12e   : > { %v491_v25 = vpop.f32.mrf.mxu1  ;;  %503 = vadd.xlane.f32.xlu0 %v502_v24 }
 0x12f   : > { %v492_v26 = vadd.f32 %v724_v18, %v491_v25 }
 0x131   : > { %v495_v27 = vmax.f32 %v492_v26, 0.0 }
 0x133   : > { %v501_v28 = vmul.f32 %v725_v21, %v495_v27 }
 0x135   : > { %v505_v29 = vsel %vm476_vm2, %v501_v28, 0.0 }
 0x136   : > { %506 = vadd.xlane.f32.xlu1 %v505_v29 }
 0x1a1   : > { %v504_v32 = vpop.xlane.xlu0 %503 }
 0x1a2   : > { %v515_v35 = vadd.f32 %v514_v33, %v504_v32 }
 0x1a4   : > { %v521_v39 = vperm.slane %v515_v35, %v520_v34 }
 0x1a9   : > { %v507_v37 = vpop.xlane.xlu1 %506 }
 0x1aa   : > { %v516_v38 = vadd.f32 %v514_v33, %v507_v37 }
 0x1ac   : > { %v523_v40 = vperm.slane %v516_v38, %v522_v36 }
 0x1ae   : > { %v525_v41 = vsel %vm524_vm3, %v523_v40, %v521_v39 }
 0x1af   : > { %528 = vst.msk [vmem:[%s406_s12] sm:$0x1] %vm527_vm4, %v525_v41 }
 0x1b0 PF: > { %s17_s26 = sadd.s32 1, %s748_s26   ;;  %s863_s24 = smov %s744_s25 }
 0x1b1   : > { %p14_p5 = scmp.ge.s32.totalorder %s17_s26, 5   ;;  %s864_s25 = smov %s866_s27 }
 0x1b3   :  { %16 = sbr.rel (!%p14_p5) target bundleno = 2 (0x2), region = 96 }

</bundles_post_ra>
